<compile_context>
chip_gen: v7x
topology: tpu7x:2x2x1
jax: 0.10.0
libtpu: 0.0.40
codegen_flags: <defaults>
</compile_context>

<pallas_src>
import jax
import jax.numpy as jnp
from jax.experimental import pallas as pl
from jax.experimental.pallas import tpu as pltpu


def _locked_dropout_kernel(mask_ref, x_ref, o_ref):
    # mask_ref: (1, LANE_TILE) pre-scaled keep-mask in x.dtype (broadcast over T)
    # x_ref / o_ref: (T_TILE, LANE_TILE) in the input dtype
    o_ref[...] = x_ref[...] * mask_ref[...]


def _round_up(v, m):
    return ((v + m - 1) // m) * m


def _choose_blocks(t, bh, itemsize, *, budget_bytes=4 * 1024 * 1024,
                   min_t_steps=8):
    """Pick (t_tile, lane_tile) for the (T, B*H) slab."""
    sublane = max(8, 32 // max(itemsize, 1))      # 8 f32 / 16 bf16 / 32 int8
    # Lane (last-dim) tile: full B*H unless even one sublane-pack of rows would
    # exceed the per-block budget, in which case tile B*H in multiples of 128.
    if bh % 128 == 0 and sublane * bh * itemsize > budget_bytes:
        lane_tile = max(128, (budget_bytes // (sublane * itemsize)) // 128 * 128)
        lane_tile = min(lane_tile, bh)
    else:
        # If B*H is not a multiple of 128 the lane dim is kept whole so the
        # block's last dim equals the full array dim (lowering requirement).
        lane_tile = bh
    row_bytes = lane_tile * itemsize

    # Largest sublane-aligned T tile that fits the per-block budget.
    t_budget = max(sublane,
                   (budget_bytes // max(row_bytes, 1)) // sublane * sublane)
    # Cap so the T grid has >= min_t_steps steps whenever T allows: keeps the
    # DMA pipeline full (read of tile i+1 overlaps writeback of tile i-1) and
    # gives v7x's two TensorCores independent parallel work.
    t_pipe = max(sublane, _round_up(pl.cdiv(t, min_t_steps), sublane))
    t_tile = min(t_budget, t_pipe, _round_up(t, sublane))
    return t_tile, lane_tile


def locked_dropout(x, p, seed, is_training=True, donate_x=False):
    """Pallas implementation of locked_dropout(is_training, x, p)."""
    if (not is_training) or p <= 0.0:
        return x
    if p >= 1.0:
        return jnp.zeros_like(x)

    t, b, h = x.shape
    bh = b * h
    keep_prob = 1.0 - float(p)
    # Keep iff uniform 32-bit draw < keep_prob * 2^32 (clamped).
    threshold = min(int(round(keep_prob * float(1 << 32))), (1 << 32) - 1)
    scale = 1.0 / keep_prob

    # One pre-scaled (1, B*H) mask per call -> locked over time by construction,
    # independent of grid/blocking choices.
    bits = jax.random.bits(jax.random.PRNGKey(seed), (1, bh), dtype=jnp.uint32)
    mask = jnp.where(bits < jnp.uint32(threshold),
                     jnp.asarray(scale, dtype=x.dtype),
                     jnp.zeros((), dtype=x.dtype))

    x2 = x.reshape(t, bh)                          # lane-dense 2-D view
    itemsize = x.dtype.itemsize
    t_tile, lane_tile = _choose_blocks(t, bh, itemsize)
    grid = (pl.cdiv(t, t_tile), pl.cdiv(bh, lane_tile))

    extra = {}
    if donate_x:
        extra["input_output_aliases"] = {1: 0}     # reuse x2's HBM buffer

    out2 = pl.pallas_call(
        _locked_dropout_kernel,
        out_shape=jax.ShapeDtypeStruct((t, bh), x.dtype),
        grid=grid,
        in_specs=[
            pl.BlockSpec((1, lane_tile), lambda i, j: (0, j)),       # mask
            pl.BlockSpec((t_tile, lane_tile), lambda i, j: (i, j)),  # x tile
        ],
        out_specs=pl.BlockSpec((t_tile, lane_tile), lambda i, j: (i, j)),
        compiler_params=pltpu.CompilerParams(
            dimension_semantics=("parallel", "parallel"),
            vmem_limit_bytes=48 * 1024 * 1024),
        cost_estimate=pl.CostEstimate(
            flops=t * bh,
            transcendentals=0,
            bytes_accessed=(2 * t * bh + bh) * itemsize),
        **extra,
    )(mask, x2)

    return out2.reshape(t, b, h)


class LockedDropout:
    """Mirror of the PyTorch module (forward only)."""

    def __init__(self, p=0.5):
        self.p = p
        self.training = True

    def __call__(self, x, seed=0):
        return locked_dropout(x, self.p, seed, is_training=self.training)


if __name__ == "__main__":
    # Small shapes consistent with (seq, batch, hidden) usage.
    T, B, H = 16, 4, 128
    key = jax.random.PRNGKey(0)
    x = jax.random.normal(key, (T, B, H), dtype=jnp.float32)

    module = LockedDropout(p=0.5)
    out = jax.block_until_ready(module(x, seed=1234))

    # Sanity checks: shape/dtype preserved and the mask is locked across time.
    assert out.shape == x.shape and out.dtype == x.dtype
    keep_first = out[0] != 0.0
    keep_last = out[-1] != 0.0
    assert bool(jnp.array_equal(keep_first, keep_last)), "mask not locked over time"
    # Values are either exactly 0 or x / (1 - p) = 2 * x.
    assert bool(jnp.all((out == 0.0) | jnp.isclose(out, 2.0 * x, atol=1e-5)))
    # Dropped fraction is roughly p.
    drop_frac = float(jnp.mean((out[0] == 0.0).astype(jnp.float32)))
    assert 0.3 < drop_frac < 0.7, f"unexpected drop fraction {drop_frac}"

    # Eval mode / p == 0 pass-through.
    module.training = False
    out_eval = jax.block_until_ready(module(x, seed=1234))
    assert bool(jnp.array_equal(out_eval, x))
    module.training = True
    out_p0 = jax.block_until_ready(locked_dropout(x, 0.0, 1234, is_training=True))
    assert bool(jnp.array_equal(out_p0, x))

    print("KERNEL_OK")
</pallas_src>

<mosaic_0001>
module attributes {stable_mosaic.version = 11 : i64} {
  func.func @_locked_dropout_kernel(%arg0: i32, %arg1: i32, %arg2: memref<1x512xf32, #tpu.memory_space<vmem>>, %arg3: memref<8x512xf32, #tpu.memory_space<vmem>>, %arg4: memref<8x512xf32, #tpu.memory_space<vmem>>) attributes {dimension_semantics = [#tpu.dimension_semantics<parallel>, #tpu.dimension_semantics<parallel>], iteration_bounds = array<i64: 2, 1>, scalar_prefetch = 0 : i64, scratch_operands = 0 : i64, tpu.core_type = #tpu.core_type<tc>, window_params = [{transform_indices = @transform_0, window_bounds = array<i64: 1, 512>}, {transform_indices = @transform_1, window_bounds = array<i64: 8, 512>}, {transform_indices = @transform_2, window_bounds = array<i64: 8, 512>}]} {
    %c0 = arith.constant 0 : index
    %c0_0 = arith.constant 0 : index
    %0 = vector.load %arg3[%c0, %c0_0] : memref<8x512xf32, #tpu.memory_space<vmem>>, vector<8x512xf32>
    %c0_1 = arith.constant 0 : index
    %c0_2 = arith.constant 0 : index
    %1 = vector.load %arg2[%c0_1, %c0_2] : memref<1x512xf32, #tpu.memory_space<vmem>>, vector<1x512xf32>
    %2 = vector.broadcast %1 : vector<1x512xf32> to vector<8x512xf32>
    %3 = arith.mulf %0, %2 : vector<8x512xf32>
    %c0_3 = arith.constant 0 : index
    %c0_4 = arith.constant 0 : index
    %4 = vector.load %arg4[%c0_3, %c0_4] : memref<8x512xf32, #tpu.memory_space<vmem>>, vector<8x512xf32>
    tpu.vector_store %arg4[%c0_3, %c0_4], %3 {strides = array<i32>} : memref<8x512xf32, #tpu.memory_space<vmem>>, vector<8x512xf32>,
    return
  }
  func.func @transform_0(%arg0: i32, %arg1: i32) -> (i32, i32) {
    %c0_i32 = arith.constant 0 : i32
    %c0_i32_0 = arith.constant 0 : i32
    return %c0_i32, %arg1 : i32, i32
  }
  func.func @transform_1(%arg0: i32, %arg1: i32) -> (i32, i32) {
    %c0_i32 = arith.constant 0 : i32
    return %arg0, %arg1 : i32, i32
  }
  func.func @transform_2(%arg0: i32, %arg1: i32) -> (i32, i32) {
    %c0_i32 = arith.constant 0 : i32
    return %arg0, %arg1 : i32, i32
  }
}

</mosaic_0001>

<bundles_post_ra>
// kernel: tpu_custom_call.1
= control target key start
LH: loop header
LB: loop body
LE: loop exit
PB: predicated region body
PF: predicated region fallthrough
CT: control target
= control target key end

     0   :  { %7 = vsyncpa [#allocation3], 0  ;;  %s823_s0 = inlined_call_operand.hbm [shape: f32[1,512], index: 0, kind: input, shape index: {}]   ;;  %s824_s1 = inlined_call_operand.hbm [shape: f32[16,512], index: 1, kind: input, shape index: {}]   ;;  %s825_s2 = inlined_call_operand.hbm [shape: f32[16,512], index: 2, kind: output, shape index: {}]  }
   0x1   :  { %8 = vsyncpa [#allocation6], 0 }
   0x2   :  { %10 = vsyncpa [#allocation6 + $0x1], 0 }
   0x3   :  { %11 = vsyncpa [#allocation4], 0 }
   0x4   :  { %13 = vsyncpa [#allocation4 + $0x1], 0  ;;  %s607_s9 = smov 0   ;;  %s609_s10 = smov 0  }
   0x5   :  { %s611_s11 = smov 0   ;;  %s613_s12 = smov 0  }
   0x6   :  { %s615_s13 = smov 0   ;;  %s617_s14 = smov 0  }
   0x7 LB: > { %s351_s15 = sadd.s32 4294967295, %s587_s14   ;;  %s352_s16 = sadd.s32 4294967294, %s587_s14   ;;  %s587_s14 = sphi %s617_s14, %s19_s14   ;;  %s583_s13 = sphi %s615_s13, %s850_s13   ;;  %s579_s12 = sphi %s613_s12, %s849_s12   ;;  %s575_s11 = sphi %s611_s11, %s848_s11   ;;  %s571_s10 = sphi %s609_s10, %s847_s10   ;;  %s567_s9 = sphi %s607_s9, %s846_s9  }
   0x8   : > { %p79_p0 = scmp.ne.s32.totalorder %s571_s10, %s567_s9  ;;  %p641_p1 = scmp.eq.s32.totalorder %s351_s15, 0 }
   0x9   : > { %p645_p2 = scmp.eq.s32.totalorder %s351_s15, 1  ;;  %p111_p3 = scmp.eq.s32.totalorder %s352_s16, 1 }
   0xa   : > { %s830_s17 = scalar_select %p641_p1, 1, 0 }
   0xb   : > { %s831_s18 = scalar_select %p645_p2, 1, 0 }
   0xc   : > { %p651_p4 = por %p641_p1, %p79_p0  ;;  %p353_p5 = scmp.ge.s32.totalorder %s587_s14, 1 }
   0xd   : > { %p656_p6 = por %p111_p3, %p79_p0  ;;  %p118_p7 = scmp.lt.s32.totalorder %s587_s14, 3 }
   0xe   : > { %s832_s19 = scalar_select %p651_p4, 1, 0 }
   0xf   : > { %s833_s20 = scalar_select %p656_p6, 1, 0 }
  0x10   : > { %p661_p8 = pnand %p353_p5, %p118_p7  ;;  %s589_s22 = smov [#allocation2]  }
  0x11   : > { %s134_s23 = sshll.u32 %s589_s22, 4  ;;  %s31_s25 = sadd.s32 1, %s583_s13  ;;  %s135_s23 = int_to_ptr.vmem [resolvable:$true] %s134_s23 }
  0x12   : > { %s834_s21 = scalar_select %p661_p8, 1, 0 }
  0x13   : > { %p378_p10 = pneg %p661_p8  ;;  %s66_s26 = sadd.s32 1, %s575_s11 }
  0x14   : > { %p676_p12 = scmp.ge.s32.totalorder %s31_s25, 2  ;;  %s443_s30 = scalar_lea.hbm %s823_s0, 64 }
  0x15   : > { %p670_p11 = pnand %p378_p10, %p641_p1  ;;  %p444_p13 = scmp.ne.s32.totalorder %s823_s0, %s443_s30 }
  0x16   : > { %s836_s27 = scalar_select %p676_p12, 1, 0 }
  0x17   : > { %p445_p0 = pneg %p670_p11  ;;  %p450_p7 = scmp.lt.u32.totalorder %s443_s30, %s823_s0 }
  0x19   : > { %p446_p3 = pnand %p445_p0, %p444_p13 }
  0x1b   : > { %p447_p5 = pneg %p446_p3 }
  0x1d   : > { %p452_p10 = pnand %p450_p7, %p447_p5 }
  0x1f   : > { %455 = shalt.err (!%p452_p10)
}
  0x20   : > { %s456_s7 = scalar_lea.vmem %s135_s23, 64  ;;  %p464_p1 = scmp.lt.s32.totalorder %s135_s23, %s135_s23 }
  0x21   : > { %p457_p9 = scmp.ne.s32.totalorder %s135_s23, %s456_s7  ;;  %p465_p8 = scmp.lt.s32.totalorder %s456_s7, %s456_s7 }
  0x23   : > { %p459_p6 = pnand %p457_p9, %p445_p0  ;;  %p466_p2 = por %p465_p8, %p464_p1 }
  0x25   : > { %p460_p4 = pneg %p459_p6 }
  0x27   : > { %p467_p12 = pnand %p466_p2, %p460_p4 }
  0x29   : > { %470 = shalt.err (!%p467_p12)
}
  0x2a   : > { %381 = dma.hbm_to_vmem [thread:$0]  (!%p670_p11), %s823_s0, 64, %s135_s23, [#allocation3]  }
  0x2b   : > { %p837_p1 = scmp.ne.s32.totalorder %s836_s27, 0  ;;  %p73_p2 = scmp.ne.s32.totalorder %s575_s11, %s571_s10 }
  0x2c   : > { %p74_p4 = scmp.eq.s32.totalorder %s587_s14, 0  ;;  %p391_p6 = scmp.lt.s32.totalorder %s587_s14, 2 }
  0x2d   : > { %s852_s25 = smov (%p837_p1, %s31_s25), 0  ;;  %p838_p12 = scmp.ne.s32.totalorder %s831_s18, 0 }
  0x2e   : > { %s61_s16 = ssub.s32 %s583_s13, %s852_s25  ;;  %p75_p9 = por %p74_p4, %p73_p2 }
  0x2f   : > { %p64_p8 = scmp.eq.s32.totalorder %s61_s16, 0  ;;  %p708_p13 = por %p838_p12, %p73_p2 }
  0x30   : > { %s145_s24 = sand.u32 1, %s575_s11   ;;  %s368_s27 = sshll.u32 %s583_s13, 9 }
  0x31   : > { %s716_s28 = scalar_select %p64_p8, %s575_s11, %s66_s26  }
  0x32   : > { %s356_s23 = sshll.u32 %s145_s24, 5  ;;  %s722_s3 = scalar_lea.hbm %s824_s1, %s368_s27 }
  0x33   : > { %s149_s18 = scalar_lea.vmem [#allocation5], %s356_s23  ;;  %p726_p11 = pnand %p391_p6, %p75_p9 }
  0x34   : > { %s159_s4 = sshll.u32 %s149_s18, 4  ;;  %s146_s26 = scalar_lea.sflag [#allocation6], %s145_s24  ;;  %s724_s4 = int_to_ptr.vmem [resolvable:$true] %s159_s4 }
  0x35   : > { %s471_s6 = scalar_lea.hbm %s722_s3, 512  ;;  %p473_p3 = pneg %p726_p11 }
  0x36   : > { %p472_p0 = scmp.ne.s32.totalorder %s722_s3, %s471_s6  ;;  %s476_s15 = scalar_lea.hbm %s824_s1, 1024 }
  0x37   : > { %p477_p10 = scmp.lt.u32.totalorder %s722_s3, %s824_s1  ;;  %p478_p1 = scmp.lt.u32.totalorder %s476_s15, %s471_s6 }
  0x38   : > { %p474_p5 = pnand %p473_p3, %p472_p0  ;;  %p480_p4 = scmp.lt.u32.totalorder %s471_s6, %s722_s3 }
  0x39   : > { %p479_p2 = por %p478_p1, %p477_p10 }
  0x3a   : > { %p475_p7 = pneg %p474_p5 }
  0x3b   : > { %p481_p6 = por %p480_p4, %p479_p2 }
  0x3d   : > { %p482_p8 = pnand %p481_p6, %p475_p7 }
  0x3f   : > { %485 = shalt.err (!%p482_p8)
}
  0x40   : > { %s486_s24 = scalar_lea.vmem %s724_s4, 512  ;;  %s590_s27 = smov [#allocation5]  }
  0x41   : > { %p487_p9 = scmp.ne.s32.totalorder %s724_s4, %s486_s24  ;;  %s491_s29 = sshll.u32 %s590_s27, 4  ;;  %s492_s29 = int_to_ptr.vmem [resolvable:$false] %s491_s29 }
  0x42   : > { %s493_s30 = scalar_lea.vmem %s492_s29, 1024  ;;  %p494_p5 = scmp.lt.s32.totalorder %s724_s4, %s492_s29 }
  0x43   : > { %p489_p12 = pnand %p487_p9, %p473_p3  ;;  %p495_p10 = scmp.lt.s32.totalorder %s493_s30, %s486_s24 }
  0x45   : > { %p490_p0 = pneg %p489_p12  ;;  %p496_p1 = por %p495_p10, %p494_p5 }
  0x47   : > { %p497_p2 = pnand %p496_p1, %p490_p0 }
  0x49   : > { %500 = shalt.err (!%p497_p2)
}
  0x4a   : > { %385 = dma.hbm_to_vmem [thread:$0]  (!%p726_p11), %s722_s3, 512, %s724_s4, %s146_s26  }
  0x4b   : > { %p841_p7 = scmp.ne.s32.totalorder %s834_s21, 0 }
  0x4c   : > { %p842_p3 = scmp.ne.s32.totalorder (!%p841_p7), %s830_s17, 0 }
  0x4d   : > { %168 = sbr.rel (%p841_p7) target bundleno = 114 (0x72), region = 28 }
  0x54   : > { %554 = dma.done.wait (%p842_p3), [#allocation3], 64  }
  0x55   : > { %556 = vsyncadd (%p842_p3), [#allocation3], 4294967232  ;;  %s762_s18 = sand.u32 1, %s571_s10   ;;  %p843_p4 = scmp.ne.s32.totalorder %s832_s19, 0 }
  0x56   : > { %s361_s6 = sshll.u32 %s762_s18, 5  ;;  %s175_s5 = scalar_lea.sflag [#allocation6], %s762_s18 }
  0x57   : > { %s178_s7 = scalar_lea.vmem [#allocation5], %s361_s6 }
  0x58   : > { %558 = dma.done.wait (%p843_p4), %s175_s5, 512  }
  0x59   : > { %560 = vsyncadd (%p843_p4), %s175_s5, 4294966784  ;;  %v208_v0 = vlaneseq  ;;  %v202_v6 = vld [vmem:[%s178_s7] sm:$0xff]  ;;  %v206_v7 = vld [vmem:[#allocation2] sm:$0xf]  ;;  %s198_s17 = scalar_lea.vmem [#allocation7], %s361_s6  ;;  %s369_s3 = sshll.u32 %s579_s12, 9 }
  0x5a   : > { %s253_s21 = sshll.u32 %s198_s17, 4  ;;  %v203_v8 = vld [vmem:[%s178_s7 + $0x8] sm:$0xff]  ;;  %v204_v11 = vld [vmem:[%s178_s7 + $0x10] sm:$0xff]  ;;  %v205_v13 = vld [vmem:[%s178_s7 + $0x18] sm:$0xff]  ;;  %s776_s12 = scalar_lea.hbm %s825_s2, %s369_s3  ;;  %s771_s21 = int_to_ptr.vmem [resolvable:$true] %s253_s21 }
  0x5b   : > { %v209_v1 = vshrl.u32 %v208_v0, 7  ;;  %s237_s26 = scalar_lea.sflag [#allocation4], %s762_s18  ;;  %s501_s8 = scalar_lea.vmem %s771_s21, 512 }
  0x5c   : > { %p502_p11 = scmp.ne.s32.totalorder %s771_s21, %s501_s8  ;;  %s591_s15 = smov [#allocation7]  }
  0x5d   : > { %v210_v2 = vsub.s32 0, %v209_v1  ;;  %v214_v3 = vsub.s32 1, %v209_v1  ;;  %v218_v4 = vsub.s32 2, %v209_v1  ;;  %v222_v5 = vsub.s32 3, %v209_v1  ;;  %s505_s16 = sshll.u32 %s591_s15, 4  ;;  %s506_s16 = int_to_ptr.vmem [resolvable:$false] %s505_s16 }
  0x5e   : > { %p503_p6 = pnand %p502_p11, %p708_p13  ;;  %s507_s23 = scalar_lea.vmem %s506_s16, 1024 }
  0x5f   : > { %v211_v9 = vrot.slane %v206_v7, %v210_v2  ;;  %v215_v10 = vrot.slane %v206_v7, %v214_v3  ;;  %v219_v12 = vrot.slane %v206_v7, %v218_v4  ;;  %v223_v14 = vrot.slane %v206_v7, %v222_v5  ;;  %p508_p9 = scmp.lt.s32.totalorder %s771_s21, %s506_s16  ;;  %p509_p12 = scmp.lt.s32.totalorder %s507_s23, %s501_s8 }
  0x60   : > { %p504_p8 = pneg %p503_p6 }
  0x61   : > { %v228_v15 = vmul.f32 %v211_v9, %v202_v6  ;;  %v229_v16 = vmul.f32 %v215_v10, %v203_v8  ;;  %v230_v17 = vmul.f32 %v219_v12, %v204_v11  ;;  %v231_v18 = vmul.f32 %v223_v14, %v205_v13  ;;  %p510_p0 = por %p509_p12, %p508_p9 }
  0x63   : > { %232 = vst [vmem:[%s198_s17] sm:$0xff] %v228_v15  ;;  %233 = vst [vmem:[%s198_s17 + $0x8] sm:$0xff] %v229_v16  ;;  %p511_p5 = pnand %p510_p0, %p504_p8 }
  0x64   : > { %234 = vst [vmem:[%s198_s17 + $0x10] sm:$0xff] %v230_v17  ;;  %235 = vst [vmem:[%s198_s17 + $0x18] sm:$0xff] %v231_v18 }
  0x65   : > { %514 = shalt.err (!%p511_p5)
}
  0x66   : > { %s515_s24 = scalar_lea.hbm %s776_s12, 512  ;;  %s519_s30 = scalar_lea.hbm %s825_s2, 1024 }
  0x67   : > { %p516_p10 = scmp.ne.s32.totalorder %s776_s12, %s515_s24  ;;  %p520_p7 = scmp.lt.u32.totalorder %s776_s12, %s825_s2 }
  0x68   : > { %p521_p3 = scmp.lt.u32.totalorder %s519_s30, %s515_s24  ;;  %p523_p11 = scmp.lt.u32.totalorder %s515_s24, %s776_s12 }
  0x69   : > { %p517_p1 = pnand %p516_p10, %p708_p13 }
  0x6a   : > { %p522_p4 = por %p521_p3, %p520_p7 }
  0x6b   : > { %p518_p2 = pneg %p517_p1 }
  0x6c   : > { %p524_p6 = por %p523_p11, %p522_p4 }
  0x6e   : > { %p525_p8 = pnand %p524_p6, %p518_p2 }
  0x70   : > { %528 = shalt.err (!%p525_p8)
}
  0x71   : > { %376 = dma.vmem_to_hbm [thread:$0]  (%p708_p13), %s771_s21, 512, %s776_s12, %s237_s26  }
  0x72 PF: > { %s265_s5 = sand.u32 1, %s567_s9   ;;  %p844_p9 = scmp.ne.s32.totalorder %s833_s20, 0 }
  0x73   : > { %p845_p12 = scmp.ge.s32.totalorder %s587_s14, 2  ;;  %s266_s7 = scalar_lea.sflag [#allocation4], %s265_s5 }
  0x75   : > { %p387_p0 = pnand %p845_p12, %p844_p9 }
  0x77   : > { %562 = dma.done.wait (!%p387_p0), %s266_s7, 512  }
  0x78   : > { %564 = vsyncadd (!%p387_p0), %s266_s7, 4294966784  ;;  %s19_s14 = sadd.s32 1, %s587_s14   ;;  %s846_s9 = smov %s571_s10 }
  0x79   : > { %p16_p5 = scmp.ge.s32.totalorder %s19_s14, 4   ;;  %s847_s10 = smov %s575_s11 }
  0x7a   : > { %s848_s11 = smov %s716_s28  ;;  %s849_s12 = smov %s583_s13 }
  0x7b   : > { %s850_s13 = smov %s852_s25  ;;  %18 = sbr.rel (!%p16_p5) target bundleno = 7 (0x7), region = 79 }
  0x82   :  { %271 = vsyncpa [#allocation3], 1 }
  0x83   :  { %273 = vsyncpa [#allocation3 + $0x1], 1 }
  0x84   :  { %274 = vsyncpa [#allocation6], 1 }
  0x85   :  { %276 = vsyncpa [#allocation6 + $0x1], 1 }
  0x86   :  { %277 = vsyncpa [#allocation4], 1 }
  0x87   :  { %279 = vsyncpa [#allocation4 + $0x1], 1 }

</bundles_post_ra>
